<compile_context>
chip_gen: v7x
topology: tpu7x:2x2x1
jax: 0.10.0
libtpu: 0.0.40
codegen_flags: <defaults>
</compile_context>

<pallas_src>
import functools

import numpy as np

import jax
import jax.numpy as jnp
from jax.experimental import pallas as pl
from jax.experimental.pallas import tpu as pltpu

# ----------------------------------------------------------------------------
# Synthetic "Config" (embedding dims) and vocab sizes (the n*_code ctor args).
# ----------------------------------------------------------------------------
DIM_CFG = {
    "highway": 4, "length": 3, "radian": 3, "lonlat": 5, "lanes": 2,
    "c_centrality": 3, "b_centrality": 3, "h_centrality": 3, "degree": 3,
    "cultural": 2, "education": 2, "food": 2, "health": 2, "service": 2,
    "transportation": 2,
}
VOCAB_CFG = {
    "highway": 7, "length": 11, "radian": 9, "lon": 13, "lat": 13, "lanes": 6,
    "c_centrality": 8, "b_centrality": 8, "h_centrality": 8, "degree": 10,
    "cultural": 5, "education": 5, "food": 5, "health": 5, "service": 5,
    "transportation": 5,
}

# Embedding tables, in module-declaration order (16 tables).
TABLE_NAMES = [
    "highway", "length", "radian", "lon", "lat", "lanes",
    "c_centrality", "b_centrality", "h_centrality", "degree",
    "cultural", "education", "food", "health", "service", "transportation",
]
TABLE_IDX = {name: i for i, name in enumerate(TABLE_NAMES)}
NUM_TABLES = len(TABLE_NAMES)
NUM_COLS = 20  # input feature columns (cols 0/1 = wayid/segid, unused)


def _table_dim(name):
    return DIM_CFG["lonlat"] if name in ("lon", "lat") else DIM_CFG[name]


# forward() lookup order: (table name, input column). lon/lat tables reused.
LOOKUPS = [
    ("highway", 2), ("length", 3), ("radian", 4),
    ("lon", 5), ("lat", 6), ("lon", 7), ("lat", 8),
    ("lanes", 9), ("c_centrality", 10), ("b_centrality", 11),
    ("h_centrality", 12), ("degree", 13), ("cultural", 14),
    ("education", 15), ("food", 16), ("health", 17),
    ("service", 18), ("transportation", 19),
]

# Static plan: (table_index, input_col, out_offset, vocab_base, vocab, dim)
LOOKUP_PLAN = []
_doff = 0
_koff = 0
for _name, _col in LOOKUPS:
    _d = _table_dim(_name)
    _v = VOCAB_CFG[_name]
    LOOKUP_PLAN.append((TABLE_IDX[_name], _col, _doff, _koff, _v, _d))
    _doff += _d
    _koff += _v
TOTAL_DIM = _doff   # = 56  (concatenated embedding width)
K_TOTAL = _koff     # = 149 (sum of vocabs over the 18 lookups)

# Constant "column selection" matrix and local-code row, built once at import.
#   SEL[col, k]     = 1.0  iff packed-vocab position k is read from input col
#   LOCAL_CODE[0,k] = k - vocab_base(k)   (code value that hits position k)
_SEL_NP = np.zeros((NUM_COLS, K_TOTAL), dtype=np.float32)
_LCODE_NP = np.zeros((1, K_TOTAL), dtype=np.float32)
for _tidx, _col, _do, _kb, _v, _d in LOOKUP_PLAN:
    _SEL_NP[_col, _kb:_kb + _v] = 1.0
    _LCODE_NP[0, _kb:_kb + _v] = np.arange(_v, dtype=np.float32)


# ----------------------------------------------------------------------------
# Pallas kernel: selection-matmul one-hot + block-diagonal-table matmul.
# ----------------------------------------------------------------------------
def feat_embedding_kernel(idx_ref, sel_ref, lcode_ref, tbl_ref, out_ref):
    # [TM, 20] codes -> f32 (all real codes are tiny ints -> exact).
    idx_f = idx_ref[...].astype(jnp.float32)

    # sel[t, k] = idx[t, col_of_k[k]]  (one MXU matmul replaces 18 per-column
    # lane broadcasts / compares / ORs).  Exact: one-hot selection in f32.
    sel = jnp.dot(idx_f, sel_ref[...], preferred_element_type=jnp.float32)

    # Combined one-hot over the packed vocab axis: single compare.
    onehot = (sel == lcode_ref[...]).astype(jnp.float32)      # [TM, K_TOTAL]

    # Single fused gather-matmul + one lane-dense [TM, 56] store.
    out_ref[...] = jnp.dot(onehot, tbl_ref[...],
                           preferred_element_type=jnp.float32)


# ----------------------------------------------------------------------------
# Wrapper: pack tables, tile N, launch.
# ----------------------------------------------------------------------------
def _round_up(x, m):
    return ((x + m - 1) // m) * m


def _pack_tables(tables):
    """Block-diagonal [K_TOTAL, TOTAL_DIM] matrix (lon/lat blocks duplicated)."""
    packed = jnp.zeros((K_TOTAL, TOTAL_DIM), jnp.float32)
    for tidx, _col, doff, kbase, vocab, dim in LOOKUP_PLAN:
        packed = packed.at[kbase:kbase + vocab, doff:doff + dim].set(
            tables[tidx].astype(jnp.float32))
    return packed


@functools.partial(jax.jit, static_argnames=("tm",))
def feat_embedding(inputs, *tables, tm=None):
    n = inputs.shape[0]
    if tm is None:
        # 2048-row tiles amortize the ~0.35 us/step grid overhead; the
        # double-buffered int32 input tile, f32 output tile, the [TM,149]
        # sel/one-hot temps and the resident constants stay well under the
        # 32 MiB scoped VMEM budget on every generation (incl. v7x).
        tm = min(2048, _round_up(n, 8))
    packed = _pack_tables(tables)
    sel_mat = jnp.asarray(_SEL_NP)        # [20, 149] f32 constant
    lcode = jnp.asarray(_LCODE_NP)        # [1, 149]  f32 constant

    grid = (pl.cdiv(n, tm),)
    grid_spec = pltpu.PrefetchScalarGridSpec(
        num_scalar_prefetch=0,
        grid=grid,
        in_specs=[
            # Row tile of the int32 feature codes.
            pl.BlockSpec((tm, NUM_COLS), lambda i: (i, 0)),
            # Constants: grid-invariant -> DMA'd once, stay VMEM-resident.
            pl.BlockSpec((NUM_COLS, K_TOTAL), lambda i: (0, 0)),
            pl.BlockSpec((1, K_TOTAL), lambda i: (0, 0)),
            pl.BlockSpec((K_TOTAL, TOTAL_DIM), lambda i: (0, 0)),
        ],
        out_specs=pl.BlockSpec((tm, TOTAL_DIM), lambda i: (i, 0)),
    )
    cost = pl.CostEstimate(
        flops=2 * n * NUM_COLS * K_TOTAL + 2 * n * K_TOTAL * TOTAL_DIM,
        transcendentals=0,
        bytes_accessed=(n * NUM_COLS * 4 + n * TOTAL_DIM * 4
                        + K_TOTAL * TOTAL_DIM * 4
                        + NUM_COLS * K_TOTAL * 4 + K_TOTAL * 4),
    )
    return pl.pallas_call(
        feat_embedding_kernel,
        out_shape=jax.ShapeDtypeStruct((n, TOTAL_DIM), jnp.float32),
        grid_spec=grid_spec,
        compiler_params=pltpu.CompilerParams(
            dimension_semantics=("parallel",),   # v7x: shard tiles over 2 TCs
            vmem_limit_bytes=32 * 1024 * 1024,
        ),
        cost_estimate=cost,
    )(inputs, sel_mat, lcode, packed)


# ----------------------------------------------------------------------------
# Deterministic parameter init, pure-JAX reference, example run.
# ----------------------------------------------------------------------------
def make_tables(key):
    tables = []
    for name in TABLE_NAMES:
        key, sub = jax.random.split(key)
        # nn.Embedding default init ~ N(0, 1)
        tables.append(jax.random.normal(
            sub, (VOCAB_CFG[name], _table_dim(name)), dtype=jnp.float32))
    return tables


def make_inputs(key, n):
    cols = []
    for c in range(NUM_COLS):
        key, sub = jax.random.split(key)
        if c < 2:
            cols.append(jnp.zeros((n,), dtype=jnp.int32))  # wayid/segid unused
        else:
            vocab = VOCAB_CFG[LOOKUPS[c - 2][0]]
            cols.append(jax.random.randint(sub, (n,), 0, vocab, dtype=jnp.int32))
    return jnp.stack(cols, axis=1)  # [N, 20] int32


def reference(inputs, tables):
    outs = []
    for tidx, col, _doff, _kbase, _vocab, _dim in LOOKUP_PLAN:
        outs.append(tables[tidx][inputs[:, col]])
    return jnp.concatenate(outs, axis=1)


if __name__ == "__main__":
    key = jax.random.PRNGKey(0)
    k_tbl, k_in1, k_in2 = jax.random.split(key, 3)

    tables = make_tables(k_tbl)

    # Small case (single tile).
    inputs = make_inputs(k_in1, n=8)
    out = jax.block_until_ready(feat_embedding(inputs, *tables))
    ref = reference(inputs, tables)
    assert out.shape == (8, TOTAL_DIM), out.shape
    assert jnp.allclose(out, ref, atol=1e-5), "mismatch vs reference (n=8)"

    # Multi-tile case with a ragged remainder tile (exercises the grid path).
    inputs2 = make_inputs(k_in2, n=1000)
    out2 = jax.block_until_ready(feat_embedding(inputs2, *tables, tm=256))
    ref2 = reference(inputs2, tables)
    assert out2.shape == (1000, TOTAL_DIM), out2.shape
    assert jnp.allclose(out2, ref2, atol=1e-5), "mismatch vs reference (n=1000)"

    print("KERNEL_OK")
</pallas_src>

<mosaic_0001>
module attributes {stable_mosaic.version = 11 : i64} {
  func.func @feat_embedding_kernel(%arg0: i32, %arg1: memref<8x20xi32, #tpu.memory_space<vmem>>, %arg2: memref<20x149xf32, #tpu.memory_space<vmem>>, %arg3: memref<1x149xf32, #tpu.memory_space<vmem>>, %arg4: memref<149x56xf32, #tpu.memory_space<vmem>>, %arg5: memref<8x56xf32, #tpu.memory_space<vmem>>) attributes {dimension_semantics = [#tpu.dimension_semantics<parallel>], iteration_bounds = array<i64: 1>, scalar_prefetch = 0 : i64, scratch_operands = 0 : i64, tpu.core_type = #tpu.core_type<tc>, window_params = [{transform_indices = @transform_0, window_bounds = array<i64: 8, 20>}, {pipeline_mode = #tpu.pipeline_mode<synchronous>, transform_indices = @transform_1, window_bounds = array<i64: 20, 149>}, {pipeline_mode = #tpu.pipeline_mode<synchronous>, transform_indices = @transform_2, window_bounds = array<i64: 1, 149>}, {pipeline_mode = #tpu.pipeline_mode<synchronous>, transform_indices = @transform_3, window_bounds = array<i64: 149, 56>}, {transform_indices = @transform_4, window_bounds = array<i64: 8, 56>}]} {
    %c0 = arith.constant 0 : index
    %c0_0 = arith.constant 0 : index
    %0 = vector.load %arg1[%c0, %c0_0] : memref<8x20xi32, #tpu.memory_space<vmem>>, vector<8x20xi32>
    %1 = arith.sitofp %0 : vector<8x20xi32> to vector<8x20xf32>
    %c0_1 = arith.constant 0 : index
    %c0_2 = arith.constant 0 : index
    %2 = vector.load %arg2[%c0_1, %c0_2] : memref<20x149xf32, #tpu.memory_space<vmem>>, vector<20x149xf32>
    %cst = arith.constant dense<0.000000e+00> : vector<8x149xf32>
    %3 = tpu.matmul %1, %2, %cst {dimension_numbers = #tpu.dot_dimension_numbers<[1], [0], [0], [1], [0, 0, 1, 1], [], []>} : vector<8x20xf32>, vector<20x149xf32>, vector<8x149xf32> -> vector<8x149xf32>
    %c0_3 = arith.constant 0 : index
    %c0_4 = arith.constant 0 : index
    %4 = vector.load %arg3[%c0_3, %c0_4] : memref<1x149xf32, #tpu.memory_space<vmem>>, vector<1x149xf32>
    %5 = vector.broadcast %4 : vector<1x149xf32> to vector<8x149xf32>
    %6 = arith.cmpf oeq, %3, %5 : vector<8x149xf32>
    %7 = arith.extui %6 : vector<8x149xi1> to vector<8x149xi32>
    %8 = arith.sitofp %7 : vector<8x149xi32> to vector<8x149xf32>
    %c0_5 = arith.constant 0 : index
    %c0_6 = arith.constant 0 : index
    %9 = vector.load %arg4[%c0_5, %c0_6] : memref<149x56xf32, #tpu.memory_space<vmem>>, vector<149x56xf32>
    %cst_7 = arith.constant dense<0.000000e+00> : vector<8x56xf32>
    %10 = tpu.matmul %8, %9, %cst_7 {dimension_numbers = #tpu.dot_dimension_numbers<[1], [0], [0], [1], [0, 0, 1, 1], [], []>} : vector<8x149xf32>, vector<149x56xf32>, vector<8x56xf32> -> vector<8x56xf32>
    %c0_8 = arith.constant 0 : index
    %c0_9 = arith.constant 0 : index
    %11 = vector.load %arg5[%c0_8, %c0_9] : memref<8x56xf32, #tpu.memory_space<vmem>>, vector<8x56xf32>
    tpu.vector_store %arg5[%c0_8, %c0_9], %10 {strides = array<i32>} : memref<8x56xf32, #tpu.memory_space<vmem>>, vector<8x56xf32>,
    return
  }
  func.func @transform_0(%arg0: i32) -> (i32, i32) {
    %c0_i32 = arith.constant 0 : i32
    %c0_i32_0 = arith.constant 0 : i32
    return %arg0, %c0_i32 : i32, i32
  }
  func.func @transform_1(%arg0: i32) -> (i32, i32) {
    %c0_i32 = arith.constant 0 : i32
    %c0_i32_0 = arith.constant 0 : i32
    %c0_i32_1 = arith.constant 0 : i32
    return %c0_i32, %c0_i32_0 : i32, i32
  }
  func.func @transform_2(%arg0: i32) -> (i32, i32) {
    %c0_i32 = arith.constant 0 : i32
    %c0_i32_0 = arith.constant 0 : i32
    %c0_i32_1 = arith.constant 0 : i32
    return %c0_i32, %c0_i32_0 : i32, i32
  }
  func.func @transform_3(%arg0: i32) -> (i32, i32) {
    %c0_i32 = arith.constant 0 : i32
    %c0_i32_0 = arith.constant 0 : i32
    %c0_i32_1 = arith.constant 0 : i32
    return %c0_i32, %c0_i32_0 : i32, i32
  }
  func.func @transform_4(%arg0: i32) -> (i32, i32) {
    %c0_i32 = arith.constant 0 : i32
    %c0_i32_0 = arith.constant 0 : i32
    return %arg0, %c0_i32 : i32, i32
  }
}

</mosaic_0001>

<bundles_post_ra>
// kernel: feat_embedding.1
= control target key start
LH: loop header
LB: loop body
LE: loop exit
PB: predicated region body
PF: predicated region fallthrough
CT: control target
= control target key end

     0   :  { %v306_v6 = vmov 0.0   ;;  %vm30_vm0 = vcmask 1043456   ;;  %v307_v9 = vmov 0.0|0.0   ;;  %vm26_vm1 = vcmask 162816   ;;  %s433_s0 = inlined_call_operand.vmem [shape: s32[8,20], index: 0, kind: input, shape index: {}]   ;;  %s434_s1 = inlined_call_operand.vmem [shape: f32[20,149], index: 1, kind: input, shape index: {}]   ;;  %s435_s2 = inlined_call_operand.vmem [shape: f32[1,149], index: 2, kind: input, shape index: {}]   ;;  %s436_s3 = inlined_call_operand.vmem [shape: f32[149,56], index: 3, kind: input, shape index: {}]   ;;  %s437_s4 = inlined_call_operand.hbm [shape: f32[8,56], index: 4, kind: output, shape index: {}]  }
   0x1   :  { %v21_v0 = vld [vmem:[%s434_s1 + $0x8] sm:$0xff]  ;;  %v23_v1 = vld [vmem:[%s434_s1 + $0x18] sm:$0xff]  ;;  %v20_v2 = vld [vmem:[%s434_s1] sm:$0xff]  ;;  %101 = vmatprep.mubr.f32.mxu0 %v306_v6  ;;  %251 = vmatprep.subr.bf16.mxu1 %v307_v9 }
   0x2   :  { %v247_v3 = vpack.c.bf16 %v23_v1, %v21_v0  ;;  %v22_v4 = vld [vmem:[%s434_s1 + $0x10] sm:$0xff]  ;;  %v25_v5 = vld [vmem:[%s434_s1 + $0x28] sm:$0xf]  ;;  %v18_v8 = vld [vmem:[%s433_s0] sm:$0xff] }
   0x3   :  { %v249_v7 = vpack.c.bf16 %v22_v4, %v20_v2  ;;  %v126_v10 = vld [vmem:[%s436_s3] sm:$0xff]  ;;  %v127_v11 = vld [vmem:[%s436_s3 + $0x8] sm:$0xff]  ;;  %v128_v13 = vld [vmem:[%s436_s3 + $0x10] sm:$0xff]  ;;  %v19_v16 = vcvt.s32.f32 %v18_v8 }
   0x4   :  { %248 = vmatprep.subr.bf16.mxu0 %v247_v3  ;;  %v252_v12 = vpack.c.bf16 %v127_v11, %v126_v10  ;;  %v129_v14 = vld [vmem:[%s436_s3 + $0x18] sm:$0xff]  ;;  %v24_v15 = vld [vmem:[%s434_s1 + $0x20] sm:$0xf]  ;;  %v131_v19 = vld [vmem:[%s436_s3 + $0x28] sm:$0xff] }
   0x5   :  { %250 = vmatpush1.bf16.msra.mxu0 %v249_v7  ;;  %v255_v17 = vpack.c.bf16 %v129_v14, %v128_v13  ;;  %v130_v18 = vld [vmem:[%s436_s3 + $0x20] sm:$0xff] }
   0x6   :  { %239 = vmatprep.subr.msk.mxu0 %vm30_vm0, %v25_v5  ;;  %253 = vmatpush1.bf16.msra.mxu1 %v252_v12 }
   0x7   :  { %254 = vmatprep.subr.bf16.mxu1 %v307_v9 }
   0x8   :  { %9 = vsyncpa [#allocation3], 0  ;;  %v258_v20 = vpack.c.bf16 %v131_v19, %v130_v18  ;;  %v132_v21 = vld [vmem:[%s436_s3 + $0x30] sm:$0xff]  ;;  %v133_v22 = vld [vmem:[%s436_s3 + $0x38] sm:$0xff]  ;;  %vm149_vm2 = vcmask 1044480   ;;  %v110_v40 = vlaneseq  ;;  %vm145_vm3 = vcmask 171008  }
   0x9   :  { %240 = vmatpush1.msk.msra.mxu0 %vm30_vm0, %v24_v15  ;;  %v261_v23 = vpack.c.bf16 %v133_v22, %v132_v21  ;;  %v134_v24 = vld [vmem:[%s436_s3 + $0x40] sm:$0xff]  ;;  %v135_v25 = vld [vmem:[%s436_s3 + $0x48] sm:$0xff]  ;;  %v136_v27 = vld [vmem:[%s436_s3 + $0x50] sm:$0xff]  ;;  %v308_v50 = vmov 1.0   ;;  %vm223_vm6 = vcmask 457728  }
   0xa   :  { %241 = vmatmul.mubr.msk.f32.vlgmr.msra.gmra.mrb[0].mxu0 %vm26_vm1, %v19_v16  ;;  %256 = vmatpush1.bf16.msra.mxu1 %v255_v17  ;;  %v264_v26 = vpack.c.bf16 %v135_v25, %v134_v24  ;;  %v137_v28 = vld [vmem:[%s436_s3 + $0x58] sm:$0xff]  ;;  %v138_v30 = vld [vmem:[%s436_s3 + $0x60] sm:$0xff]  ;;  %v139_v31 = vld [vmem:[%s436_s3 + $0x68] sm:$0xff]  ;;  %v111_v41 = vshrl.u32 %v110_v40, 7 }
   0xb   :  { %257 = vmatprep.subr.bf16.mxu1 %v307_v9  ;;  %v267_v29 = vpack.c.bf16 %v137_v28, %v136_v27  ;;  %v270_v32 = vpack.c.bf16 %v139_v31, %v138_v30  ;;  %v140_v33 = vld [vmem:[%s436_s3 + $0x70] sm:$0xff]  ;;  %v141_v34 = vld [vmem:[%s436_s3 + $0x78] sm:$0xff]  ;;  %v142_v36 = vld [vmem:[%s436_s3 + $0x80] sm:$0xff] }
   0xc   :  { %v273_v35 = vpack.c.bf16 %v141_v34, %v140_v33  ;;  %v143_v37 = vld [vmem:[%s436_s3 + $0x88] sm:$0xff]  ;;  %v144_v39 = vld [vmem:[%s436_s3 + $0x90] sm:$0x1f]  ;;  %v116_v42 = vsub.s32 1, %v111_v41  ;;  %v108_v43 = vld [vmem:[%s435_s2] sm:$0x3] }
   0xd   :  { %v276_v38 = vpack.c.bf16 %v143_v37, %v142_v36  ;;  %v112_v44 = vsub.s32 0, %v111_v41  ;;  %s309_s3 = smov [#allocation2]  }
   0xe   :  { %259 = vmatpush1.bf16.msra.mxu1 %v258_v20  ;;  %v117_v45 = vrot.slane %v108_v43, %v116_v42  ;;  %s231_s1 = sshll.u32 %s309_s3, 4  ;;  %s232_s1 = int_to_ptr.vmem [resolvable:$true] %s231_s1 }
   0xf   :  { %260 = vmatprep.subr.bf16.mxu1 %v307_v9  ;;  %v113_v47 = vrot.slane %v108_v43, %v112_v44  ;;  %s282_s2 = scalar_lea.vmem %s232_s1, 128  ;;  %p287_p1 = scmp.lt.s32.totalorder %s232_s1, %s232_s1 }
  0x10   :  { %p283_p0 = scmp.ne.s32.totalorder %s232_s1, %s282_s2  ;;  %p288_p2 = scmp.lt.s32.totalorder %s282_s2, %s282_s2 }
  0x12   :  { %262 = vmatpush1.bf16.msra.mxu1 %v261_v23  ;;  %p289_p3 = por %p288_p2, %p287_p1 }
  0x13   :  { %263 = vmatprep.subr.bf16.mxu1 %v307_v9 }
  0x14   :  { %p290_p4 = pnand %p289_p3, %p283_p0 }
  0x16   :  { %265 = vmatpush1.bf16.msra.mxu1 %v264_v26 }
  0x17   :  { %266 = vmatprep.subr.bf16.mxu1 %v307_v9 }
  0x1a   :  { %268 = vmatpush1.bf16.msra.mxu1 %v267_v29 }
  0x1b   :  { %269 = vmatprep.subr.bf16.mxu1 %v307_v9 }
  0x1e   :  { %271 = vmatpush1.bf16.msra.mxu1 %v270_v32 }
  0x1f   :  { %272 = vmatprep.subr.bf16.mxu1 %v307_v9 }
  0x22   :  { %274 = vmatpush1.bf16.msra.mxu1 %v273_v35 }
  0x23   :  { %275 = vmatprep.subr.bf16.mxu1 %v307_v9 }
  0x26   :  { %277 = vmatpush1.bf16.msra.mxu1 %v276_v38 }
  0x27   :  { %189 = vmatprep.subr.mxu1 %v306_v6 }
  0x2a   :  { %244 = vmatpush1.msk.msra.mxu1 %vm149_vm2, %v144_v39 }
  0xdd   :  { %v103_v46 = vpop.f32.mrb[0].mxu0 }
  0xde   :  { %v105_v48 = vpop.f32.mrb[1].mxu0  ;;  %vm120_vm5 = vcmp.eq.f32.partialorder %v103_v46, %v113_v47 }
  0xdf   :  { %vm121_vm4 = vcmp.eq.f32.partialorder %v105_v48, %v117_v45 }
  0xe0   :  { %v243_v49 = vsel %vm121_vm4, 1.0, %v306_v6 }
  0xe1   :  { %245 = vmatprep.mubr.msk.f32.mxu1 %vm145_vm3, %v243_v49 }
  0xe2   :  { %246 = vmatmul.mubr.msk.f32.vlgmr.msra.gmra.mrb[0].mxu1 %vm120_vm5, %v308_v50 }
 0x1b5   :  { %v219_v51 = vpop.f32.mrb[0].mxu1 }
 0x1b6   :  { %224 = vst.msk [vmem:[#allocation2] sm:$0xff] %vm223_vm6, %v219_v51  ;;  %v221_v52 = vpop.f32.mrb[1].mxu1 }
 0x1b7   :  { %293 = shalt.err (!%p290_p4)
}
 0x1b8   :  { %s294_s16 = scalar_lea.hbm %s437_s4, 128 }
 0x1b9   :  { %p295_p5 = scmp.ne.s32.totalorder %s437_s4, %s294_s16  ;;  %p298_p6 = scmp.lt.u32.totalorder %s294_s16, %s437_s4 }
 0x1bb   :  { %p300_p7 = pnand %p298_p6, %p295_p5 }
 0x1bd   :  { %303 = shalt.err (!%p300_p7)
}
 0x1be   :  { %234 = dma.vmem_to_hbm [thread:$0]  %s232_s1, 128, %s437_s4, [#allocation3]  }
 0x1bf   :  { %304 = dma.done.wait [#allocation3], 128  }
 0x1c0   :  { %305 = vsyncadd [#allocation3], 4294967168 }
 0x1c1   :  { %238 = vsyncpa [#allocation3], 1 }

</bundles_post_ra>
